<compile_context>
chip_gen: v7x
topology: tpu7x:2x2x1
jax: 0.10.0
libtpu: 0.0.40
codegen_flags: <defaults>
</compile_context>

<pallas_src>
import jax
import jax.numpy as jnp
from jax.experimental import pallas as pl
from jax.experimental.pallas import tpu as pltpu


def _relu_conv1x1_kernel(w_ref, x_ref, o_ref):
    # w_ref: (2*C*C,) float32 in SMEM = [w1 row-major | w2 row-major].
    # x_ref, o_ref: (N, C, HW) float32 in VMEM; HW is the lane (last) dim.
    C = x_ref.shape[1]

    # conv1 (1x1, no bias) + ReLU: VPU broadcast multiply-adds, reading each
    # channel slice on demand (sublane-sliced vlds, no full-slab materialize).
    h = []
    for c in range(C):
        acc = w_ref[c * C + 0] * x_ref[:, 0, :]
        for k in range(1, C):
            acc = acc + w_ref[c * C + k] * x_ref[:, k, :]
        h.append(jnp.maximum(acc, 0.0))

    # conv2 (1x1, no bias) + ReLU: store each output channel directly —
    # no jnp.stack sublane interleave and no temporary (N, C, HW) slab.
    off = C * C
    for c in range(C):
        acc = w_ref[off + c * C + 0] * h[0]
        for k in range(1, C):
            acc = acc + w_ref[off + c * C + k] * h[k]
        o_ref[:, c, :] = jnp.maximum(acc, 0.0)


def relu_model_forward(x_nchw, w1, w2):
    """Forward pass of ReLUModel.

    x_nchw: (N, C, H, W) float32
    w1, w2: (C, C, 1, 1) float32  (Conv2d weights, bias=False)
    returns (N, C, H, W) float32
    """
    N, C, H, W = x_nchw.shape
    HW = H * W

    # Pure reshapes only — no HBM transposes.  Pack both weight matrices into
    # a single flat SMEM operand (one DMA descriptor, 128 B padded).
    x3d = x_nchw.reshape(N, C, HW)                      # (N, C, HW), lane-dense
    w_packed = jnp.concatenate(
        [w1.reshape(C * C), w2.reshape(C * C)], axis=0)  # (2*C*C,)

    out3d = pl.pallas_call(
        _relu_conv1x1_kernel,
        out_shape=jax.ShapeDtypeStruct((N, C, HW), x_nchw.dtype),
        in_specs=[
            pl.BlockSpec(memory_space=pltpu.MemorySpace.SMEM),   # packed weights
            pl.BlockSpec(memory_space=pltpu.MemorySpace.VMEM),   # x (full slab)
        ],
        out_specs=pl.BlockSpec(memory_space=pltpu.MemorySpace.VMEM),
    )(w_packed, x3d)

    return out3d.reshape(N, C, H, W)


if __name__ == "__main__":
    key = jax.random.PRNGKey(0)
    k_x, k_w1, k_w2 = jax.random.split(key, 3)

    num_channels = 3   # module default
    N, H, W = 2, 16, 16

    x = jax.random.normal(k_x, (N, num_channels, H, W), dtype=jnp.float32)
    # Deterministic synthetic Conv2d weights, (C_out, C_in, 1, 1), bias=False.
    bound = 1.0 / jnp.sqrt(jnp.float32(num_channels))
    w1 = jax.random.uniform(k_w1, (num_channels, num_channels, 1, 1),
                            minval=-bound, maxval=bound, dtype=jnp.float32)
    w2 = jax.random.uniform(k_w2, (num_channels, num_channels, 1, 1),
                            minval=-bound, maxval=bound, dtype=jnp.float32)

    out = relu_model_forward(x, w1, w2)
    out = jax.block_until_ready(out)

    # Pure-JAX reference (same math, no Pallas).
    x3d = x.reshape(N, num_channels, H * W)
    w1m = w1.reshape(num_channels, num_channels)
    w2m = w2.reshape(num_channels, num_channels)
    h_ref = jnp.maximum(jnp.einsum('ck,nkm->ncm', w1m, x3d), 0.0)
    ref = jnp.maximum(jnp.einsum('ck,nkm->ncm', w2m, h_ref), 0.0)
    ref = ref.reshape(N, num_channels, H, W)

    assert out.shape == (N, num_channels, H, W)
    assert jnp.allclose(out, ref, atol=1e-5, rtol=1e-5)

    print("KERNEL_OK")
</pallas_src>

<mosaic_0001>
module attributes {stable_mosaic.version = 11 : i64} {
  func.func @_relu_conv1x1_kernel(%arg0: memref<18xf32, #tpu.memory_space<smem>>, %arg1: memref<2x3x256xf32, #tpu.memory_space<vmem>>, %arg2: memref<2x3x256xf32, #tpu.memory_space<vmem>>) attributes {dimension_semantics = [], scalar_prefetch = 0 : i64, scratch_operands = 0 : i64, tpu.core_type = #tpu.core_type<tc>} {
    %c0 = arith.constant 0 : index
    %0 = memref.load %arg0[%c0] : memref<18xf32, #tpu.memory_space<smem>>
    %c0_0 = arith.constant 0 : index
    %c0_1 = arith.constant 0 : index
    %c0_2 = arith.constant 0 : index
    %1 = vector.load %arg1[%c0_0, %c0_1, %c0_2] : memref<2x3x256xf32, #tpu.memory_space<vmem>>, vector<2x1x256xf32>
    %2 = vector.shape_cast %1 : vector<2x1x256xf32> to vector<2x256xf32>
    %3 = vector.broadcast %0 : f32 to vector<2x256xf32>
    %4 = arith.mulf %3, %2 : vector<2x256xf32>
    %c1 = arith.constant 1 : index
    %5 = memref.load %arg0[%c1] : memref<18xf32, #tpu.memory_space<smem>>
    %c0_3 = arith.constant 0 : index
    %c1_4 = arith.constant 1 : index
    %c0_5 = arith.constant 0 : index
    %6 = vector.load %arg1[%c0_3, %c1_4, %c0_5] : memref<2x3x256xf32, #tpu.memory_space<vmem>>, vector<2x1x256xf32>
    %7 = vector.shape_cast %6 : vector<2x1x256xf32> to vector<2x256xf32>
    %8 = vector.broadcast %5 : f32 to vector<2x256xf32>
    %9 = arith.mulf %8, %7 : vector<2x256xf32>
    %10 = arith.addf %4, %9 : vector<2x256xf32>
    %c2 = arith.constant 2 : index
    %11 = memref.load %arg0[%c2] : memref<18xf32, #tpu.memory_space<smem>>
    %c0_6 = arith.constant 0 : index
    %c2_7 = arith.constant 2 : index
    %c0_8 = arith.constant 0 : index
    %12 = vector.load %arg1[%c0_6, %c2_7, %c0_8] : memref<2x3x256xf32, #tpu.memory_space<vmem>>, vector<2x1x256xf32>
    %13 = vector.shape_cast %12 : vector<2x1x256xf32> to vector<2x256xf32>
    %14 = vector.broadcast %11 : f32 to vector<2x256xf32>
    %15 = arith.mulf %14, %13 : vector<2x256xf32>
    %16 = arith.addf %10, %15 : vector<2x256xf32>
    %cst = arith.constant 0.000000e+00 : f32
    %17 = vector.broadcast %cst : f32 to vector<2x256xf32>
    %18 = arith.maximumf %16, %17 : vector<2x256xf32>
    %c3 = arith.constant 3 : index
    %19 = memref.load %arg0[%c3] : memref<18xf32, #tpu.memory_space<smem>>
    %c0_9 = arith.constant 0 : index
    %c0_10 = arith.constant 0 : index
    %c0_11 = arith.constant 0 : index
    %20 = vector.load %arg1[%c0_9, %c0_10, %c0_11] : memref<2x3x256xf32, #tpu.memory_space<vmem>>, vector<2x1x256xf32>
    %21 = vector.shape_cast %20 : vector<2x1x256xf32> to vector<2x256xf32>
    %22 = vector.broadcast %19 : f32 to vector<2x256xf32>
    %23 = arith.mulf %22, %21 : vector<2x256xf32>
    %c4 = arith.constant 4 : index
    %24 = memref.load %arg0[%c4] : memref<18xf32, #tpu.memory_space<smem>>
    %c0_12 = arith.constant 0 : index
    %c1_13 = arith.constant 1 : index
    %c0_14 = arith.constant 0 : index
    %25 = vector.load %arg1[%c0_12, %c1_13, %c0_14] : memref<2x3x256xf32, #tpu.memory_space<vmem>>, vector<2x1x256xf32>
    %26 = vector.shape_cast %25 : vector<2x1x256xf32> to vector<2x256xf32>
    %27 = vector.broadcast %24 : f32 to vector<2x256xf32>
    %28 = arith.mulf %27, %26 : vector<2x256xf32>
    %29 = arith.addf %23, %28 : vector<2x256xf32>
    %c5 = arith.constant 5 : index
    %30 = memref.load %arg0[%c5] : memref<18xf32, #tpu.memory_space<smem>>
    %c0_15 = arith.constant 0 : index
    %c2_16 = arith.constant 2 : index
    %c0_17 = arith.constant 0 : index
    %31 = vector.load %arg1[%c0_15, %c2_16, %c0_17] : memref<2x3x256xf32, #tpu.memory_space<vmem>>, vector<2x1x256xf32>
    %32 = vector.shape_cast %31 : vector<2x1x256xf32> to vector<2x256xf32>
    %33 = vector.broadcast %30 : f32 to vector<2x256xf32>
    %34 = arith.mulf %33, %32 : vector<2x256xf32>
    %35 = arith.addf %29, %34 : vector<2x256xf32>
    %cst_18 = arith.constant 0.000000e+00 : f32
    %36 = vector.broadcast %cst_18 : f32 to vector<2x256xf32>
    %37 = arith.maximumf %35, %36 : vector<2x256xf32>
    %c6 = arith.constant 6 : index
    %38 = memref.load %arg0[%c6] : memref<18xf32, #tpu.memory_space<smem>>
    %c0_19 = arith.constant 0 : index
    %c0_20 = arith.constant 0 : index
    %c0_21 = arith.constant 0 : index
    %39 = vector.load %arg1[%c0_19, %c0_20, %c0_21] : memref<2x3x256xf32, #tpu.memory_space<vmem>>, vector<2x1x256xf32>
    %40 = vector.shape_cast %39 : vector<2x1x256xf32> to vector<2x256xf32>
    %41 = vector.broadcast %38 : f32 to vector<2x256xf32>
    %42 = arith.mulf %41, %40 : vector<2x256xf32>
    %c7 = arith.constant 7 : index
    %43 = memref.load %arg0[%c7] : memref<18xf32, #tpu.memory_space<smem>>
    %c0_22 = arith.constant 0 : index
    %c1_23 = arith.constant 1 : index
    %c0_24 = arith.constant 0 : index
    %44 = vector.load %arg1[%c0_22, %c1_23, %c0_24] : memref<2x3x256xf32, #tpu.memory_space<vmem>>, vector<2x1x256xf32>
    %45 = vector.shape_cast %44 : vector<2x1x256xf32> to vector<2x256xf32>
    %46 = vector.broadcast %43 : f32 to vector<2x256xf32>
    %47 = arith.mulf %46, %45 : vector<2x256xf32>
    %48 = arith.addf %42, %47 : vector<2x256xf32>
    %c8 = arith.constant 8 : index
    %49 = memref.load %arg0[%c8] : memref<18xf32, #tpu.memory_space<smem>>
    %c0_25 = arith.constant 0 : index
    %c2_26 = arith.constant 2 : index
    %c0_27 = arith.constant 0 : index
    %50 = vector.load %arg1[%c0_25, %c2_26, %c0_27] : memref<2x3x256xf32, #tpu.memory_space<vmem>>, vector<2x1x256xf32>
    %51 = vector.shape_cast %50 : vector<2x1x256xf32> to vector<2x256xf32>
    %52 = vector.broadcast %49 : f32 to vector<2x256xf32>
    %53 = arith.mulf %52, %51 : vector<2x256xf32>
    %54 = arith.addf %48, %53 : vector<2x256xf32>
    %cst_28 = arith.constant 0.000000e+00 : f32
    %55 = vector.broadcast %cst_28 : f32 to vector<2x256xf32>
    %56 = arith.maximumf %54, %55 : vector<2x256xf32>
    %c9 = arith.constant 9 : index
    %57 = memref.load %arg0[%c9] : memref<18xf32, #tpu.memory_space<smem>>
    %58 = vector.broadcast %57 : f32 to vector<2x256xf32>
    %59 = arith.mulf %58, %18 : vector<2x256xf32>
    %c10 = arith.constant 10 : index
    %60 = memref.load %arg0[%c10] : memref<18xf32, #tpu.memory_space<smem>>
    %61 = vector.broadcast %60 : f32 to vector<2x256xf32>
    %62 = arith.mulf %61, %37 : vector<2x256xf32>
    %63 = arith.addf %59, %62 : vector<2x256xf32>
    %c11 = arith.constant 11 : index
    %64 = memref.load %arg0[%c11] : memref<18xf32, #tpu.memory_space<smem>>
    %65 = vector.broadcast %64 : f32 to vector<2x256xf32>
    %66 = arith.mulf %65, %56 : vector<2x256xf32>
    %67 = arith.addf %63, %66 : vector<2x256xf32>
    %cst_29 = arith.constant 0.000000e+00 : f32
    %68 = vector.broadcast %cst_29 : f32 to vector<2x256xf32>
    %69 = arith.maximumf %67, %68 : vector<2x256xf32>
    %c0_30 = arith.constant 0 : index
    %c0_31 = arith.constant 0 : index
    %c0_32 = arith.constant 0 : index
    %70 = vector.load %arg2[%c0_30, %c0_31, %c0_32] : memref<2x3x256xf32, #tpu.memory_space<vmem>>, vector<2x1x256xf32>
    %71 = vector.shape_cast %70 : vector<2x1x256xf32> to vector<2x256xf32>
    %72 = vector.shape_cast %69 : vector<2x256xf32> to vector<2x1x256xf32>
    tpu.vector_store %arg2[%c0_30, %c0_31, %c0_32], %72 {strides = array<i32>} : memref<2x3x256xf32, #tpu.memory_space<vmem>>, vector<2x1x256xf32>,
    %c12 = arith.constant 12 : index
    %73 = memref.load %arg0[%c12] : memref<18xf32, #tpu.memory_space<smem>>
    %74 = vector.broadcast %73 : f32 to vector<2x256xf32>
    %75 = arith.mulf %74, %18 : vector<2x256xf32>
    %c13 = arith.constant 13 : index
    %76 = memref.load %arg0[%c13] : memref<18xf32, #tpu.memory_space<smem>>
    %77 = vector.broadcast %76 : f32 to vector<2x256xf32>
    %78 = arith.mulf %77, %37 : vector<2x256xf32>
    %79 = arith.addf %75, %78 : vector<2x256xf32>
    %c14 = arith.constant 14 : index
    %80 = memref.load %arg0[%c14] : memref<18xf32, #tpu.memory_space<smem>>
    %81 = vector.broadcast %80 : f32 to vector<2x256xf32>
    %82 = arith.mulf %81, %56 : vector<2x256xf32>
    %83 = arith.addf %79, %82 : vector<2x256xf32>
    %cst_33 = arith.constant 0.000000e+00 : f32
    %84 = vector.broadcast %cst_33 : f32 to vector<2x256xf32>
    %85 = arith.maximumf %83, %84 : vector<2x256xf32>
    %c0_34 = arith.constant 0 : index
    %c1_35 = arith.constant 1 : index
    %c0_36 = arith.constant 0 : index
    %86 = vector.load %arg2[%c0_34, %c1_35, %c0_36] : memref<2x3x256xf32, #tpu.memory_space<vmem>>, vector<2x1x256xf32>
    %87 = vector.shape_cast %86 : vector<2x1x256xf32> to vector<2x256xf32>
    %88 = vector.shape_cast %85 : vector<2x256xf32> to vector<2x1x256xf32>
    tpu.vector_store %arg2[%c0_34, %c1_35, %c0_36], %88 {strides = array<i32>} : memref<2x3x256xf32, #tpu.memory_space<vmem>>, vector<2x1x256xf32>,
    %c15 = arith.constant 15 : index
    %89 = memref.load %arg0[%c15] : memref<18xf32, #tpu.memory_space<smem>>
    %90 = vector.broadcast %89 : f32 to vector<2x256xf32>
    %91 = arith.mulf %90, %18 : vector<2x256xf32>
    %c16 = arith.constant 16 : index
    %92 = memref.load %arg0[%c16] : memref<18xf32, #tpu.memory_space<smem>>
    %93 = vector.broadcast %92 : f32 to vector<2x256xf32>
    %94 = arith.mulf %93, %37 : vector<2x256xf32>
    %95 = arith.addf %91, %94 : vector<2x256xf32>
    %c17 = arith.constant 17 : index
    %96 = memref.load %arg0[%c17] : memref<18xf32, #tpu.memory_space<smem>>
    %97 = vector.broadcast %96 : f32 to vector<2x256xf32>
    %98 = arith.mulf %97, %56 : vector<2x256xf32>
    %99 = arith.addf %95, %98 : vector<2x256xf32>
    %cst_37 = arith.constant 0.000000e+00 : f32
    %100 = vector.broadcast %cst_37 : f32 to vector<2x256xf32>
    %101 = arith.maximumf %99, %100 : vector<2x256xf32>
    %c0_38 = arith.constant 0 : index
    %c2_39 = arith.constant 2 : index
    %c0_40 = arith.constant 0 : index
    %102 = vector.load %arg2[%c0_38, %c2_39, %c0_40] : memref<2x3x256xf32, #tpu.memory_space<vmem>>, vector<2x1x256xf32>
    %103 = vector.shape_cast %102 : vector<2x1x256xf32> to vector<2x256xf32>
    %104 = vector.shape_cast %101 : vector<2x256xf32> to vector<2x1x256xf32>
    tpu.vector_store %arg2[%c0_38, %c2_39, %c0_40], %104 {strides = array<i32>} : memref<2x3x256xf32, #tpu.memory_space<vmem>>, vector<2x1x256xf32>,
    return
  }
}

</mosaic_0001>

<bundles_post_ra>
// kernel: tpu_custom_call.1
= control target key start
LH: loop header
LB: loop body
LE: loop exit
PB: predicated region body
PF: predicated region fallthrough
CT: control target
= control target key end

     0   :  { %7 = vsyncpa [#allocation3], 0  ;;  %s324_s0 = inlined_call_operand.vmem [shape: f32[18], index: 0, kind: input, shape index: {}]   ;;  %s325_s1 = inlined_call_operand.vmem [shape: f32[2,3,256], index: 1, kind: input, shape index: {}]   ;;  %s326_s2 = inlined_call_operand.vmem [shape: f32[2,3,256], index: 2, kind: output, shape index: {}]  }
   0x1   :  { %s14_s11 = sshll.u32 %s324_s0, 4  ;;  %s15_s11 = int_to_ptr.vmem [resolvable:$true] %s14_s11 }
   0x2   :  { %s191_s12 = scalar_lea.vmem %s15_s11, 16  ;;  %p196_p1 = scmp.lt.s32.totalorder %s15_s11, %s15_s11 }
   0x3   :  { %p192_p0 = scmp.ne.s32.totalorder %s15_s11, %s191_s12  ;;  %p197_p2 = scmp.lt.s32.totalorder %s191_s12, %s191_s12 }
   0x5   :  { %p198_p3 = por %p197_p2, %p196_p1 }
   0x7   :  { %p199_p4 = pnand %p198_p3, %p192_p0 }
   0x9   :  { %202 = shalt.err (!%p199_p4)
}
   0xa   :  { %s205_s13 = smov [#allocation2]  }
   0xb   :  { %17 = dma.vmem_to_smem %s15_s11, 16, %s205_s13, [#allocation3]  }
   0xc   :  { %203 = dma.done.wait [#allocation3], 16  }
   0xd   :  { %204 = vsyncadd [#allocation3], 4294967280 }
   0xe   :  { %23 = sfence }
   0xf   :  { %s24_s14 = sld [smem:[#allocation2]]  ;;  %s164_s15 = sld [smem:[#allocation2 + $0x1]]  ;;  %v25_v0 = vld [vmem:[%s325_s1] ss:$4 sm:$0x3]  ;;  %v107_v9 = vlaneseq }
  0x10   :  { %s227_s0 = sld [smem:[#allocation2 + $0x2]]  ;;  %v165_v1 = vld [vmem:[%s325_s1 + $0x1] ss:$4 sm:$0x3]  ;;  %s232_s20 = sld [smem:[#allocation2 + $0x3]] }
  0x11   :  { %s234_s21 = sld [smem:[#allocation2 + $0x4]]  ;;  %v168_v2 = vld [vmem:[%s325_s1 + $0x2] ss:$4 sm:$0x3]  ;;  %s239_s24 = sld [smem:[#allocation2 + $0x5]]  ;;  %vm280_vm0 = vcmp.lt.s32.totalorder %v107_v9, 256 }
  0x12   :  { %s241_s25 = sld [smem:[#allocation2 + $0x6]]  ;;  %s243_s26 = sld [smem:[#allocation2 + $0x7]]  ;;  %v163_v6 = vld [vmem:[%s325_s1 + $0x8] ss:$4 sm:$0x3] }
  0x13   :  { %s245_s27 = sld [smem:[#allocation2 + $0x8]]  ;;  %s247_s28 = sld [smem:[#allocation2 + $0x9]]  ;;  %v166_v11 = vld [vmem:[%s325_s1 + $0x9] ss:$4 sm:$0x3] }
  0x14   :  { %s249_s29 = sld [smem:[#allocation2 + $0xa]]  ;;  %s251_s30 = sld [smem:[#allocation2 + $0xb]]  ;;  %v169_v28 = vld [vmem:[%s325_s1 + $0xa] ss:$4 sm:$0x3] }
  0x15   :  { %v28_v3 = vstv %s24_s14  ;;  %v36_v5 = vstv %s164_s15  ;;  %s263_s7 = sld [smem:[#allocation2 + $0xc]]  ;;  %s265_s8 = sld [smem:[#allocation2 + $0xd]] }
  0x16   :  { %v29_v4 = vmul.f32 %v28_v3, %v25_v0  ;;  %v37_v7 = vmul.f32 %v165_v1, %v36_v5  ;;  %v46_v8 = vstv %s227_s0  ;;  %v30_v10 = vmul.f32 %v163_v6, %v28_v3  ;;  %s273_s11 = sld [smem:[#allocation2 + $0xe]]  ;;  %s278_s12 = sld [smem:[#allocation2 + $0xf]] }
  0x17   :  { %v47_v12 = vmul.f32 %v168_v2, %v46_v8  ;;  %v54_v13 = vstv %s232_s20  ;;  %v58_v14 = vstv %s234_s21  ;;  %v38_v15 = vmul.f32 %v166_v11, %v36_v5  ;;  %s284_s1 = sld [smem:[#allocation2 + $0x10]]  ;;  %s286_s13 = sld [smem:[#allocation2 + $0x11]] }
  0x18   :  { %v39_v16 = vadd.f32 %v37_v7, %v29_v4  ;;  %v55_v17 = vmul.f32 %v54_v13, %v25_v0  ;;  %v59_v18 = vmul.f32 %v165_v1, %v58_v14  ;;  %v64_v19 = vstv %s239_s24 }
  0x19   :  { %v65_v20 = vmul.f32 %v168_v2, %v64_v19  ;;  %v72_v21 = vstv %s241_s25  ;;  %v76_v22 = vstv %s243_s26  ;;  %v82_v23 = vstv %s245_s27 }
  0x1a   :  { %v49_v24 = vadd.f32 %v47_v12, %v39_v16  ;;  %v61_v25 = vadd.f32 %v59_v18, %v55_v17  ;;  %v73_v26 = vmul.f32 %v72_v21, %v25_v0  ;;  %v77_v27 = vmul.f32 %v165_v1, %v76_v22 }
  0x1b   :  { %v83_v29 = vmul.f32 %v168_v2, %v82_v23  ;;  %v90_v30 = vstv %s247_s28  ;;  %v94_v31 = vstv %s249_s29  ;;  %v100_v32 = vstv %s251_s30 }
  0x1c   :  { %v51_v33 = vmax.f32 %v49_v24, 0.0  ;;  %v67_v34 = vadd.f32 %v65_v20, %v61_v25  ;;  %v79_v35 = vadd.f32 %v77_v27, %v73_v26  ;;  %v40_v36 = vadd.f32 %v38_v15, %v30_v10 }
  0x1d   :  { %v48_v38 = vmul.f32 %v169_v28, %v46_v8  ;;  %v56_v39 = vmul.f32 %v163_v6, %v54_v13  ;;  %v60_v40 = vmul.f32 %v166_v11, %v58_v14  ;;  %v66_v41 = vmul.f32 %v169_v28, %v64_v19 }
  0x1e   :  { %v69_v42 = vmax.f32 %v67_v34, 0.0  ;;  %v85_v43 = vadd.f32 %v83_v29, %v79_v35  ;;  %v91_v44 = vmul.f32 %v90_v30, %v51_v33  ;;  %v74_v45 = vmul.f32 %v163_v6, %v72_v21 }
  0x1f   :  { %v50_v46 = vadd.f32 %v48_v38, %v40_v36  ;;  %v62_v47 = vadd.f32 %v60_v40, %v56_v39  ;;  %v78_v48 = vmul.f32 %v166_v11, %v76_v22  ;;  %v84_v49 = vmul.f32 %v169_v28, %v82_v23 }
  0x20   :  { %v87_v50 = vmax.f32 %v85_v43, 0.0  ;;  %v95_v51 = vmul.f32 %v94_v31, %v69_v42  ;;  %v115_v52 = vstv %s263_s7  ;;  %v119_v53 = vstv %s265_s8 }
  0x21   :  { %v52_v54 = vmax.f32 %v50_v46, 0.0  ;;  %v68_v55 = vadd.f32 %v66_v41, %v62_v47  ;;  %v80_v56 = vadd.f32 %v78_v48, %v74_v45  ;;  %v116_v57 = vmul.f32 %v115_v52, %v51_v33 }
  0x22   :  { %v97_v58 = vadd.f32 %v95_v51, %v91_v44  ;;  %v101_v59 = vmul.f32 %v100_v32, %v87_v50  ;;  %v120_v60 = vmul.f32 %v119_v53, %v69_v42  ;;  %v125_v61 = vstv %s273_s11 }
  0x23   :  { %v70_v62 = vmax.f32 %v68_v55, 0.0  ;;  %v86_v63 = vadd.f32 %v84_v49, %v80_v56  ;;  %v92_v0 = vmul.f32 %v90_v30, %v52_v54  ;;  %v126_v1 = vmul.f32 %v125_v61, %v87_v50 }
  0x24   :  { %v103_v2 = vadd.f32 %v101_v59, %v97_v58  ;;  %v122_v3 = vadd.f32 %v120_v60, %v116_v57  ;;  %v117_v4 = vmul.f32 %v115_v52, %v52_v54  ;;  %v137_v5 = vstv %s278_s12 }
  0x25   :  { %v88_v6 = vmax.f32 %v86_v63, 0.0  ;;  %v96_v7 = vmul.f32 %v94_v31, %v70_v62  ;;  %v121_v8 = vmul.f32 %v119_v53, %v70_v62  ;;  %v138_v9 = vmul.f32 %v137_v5, %v51_v33 }
  0x26   :  { %v105_v10 = vmax.f32 %v103_v2, 0.0  ;;  %v128_v11 = vadd.f32 %v126_v1, %v122_v3  ;;  %v141_v12 = vstv %s284_s1  ;;  %v147_v13 = vstv %s286_s13 }
  0x27   :  { %v98_v14 = vadd.f32 %v96_v7, %v92_v0  ;;  %v102_v15 = vmul.f32 %v100_v32, %v88_v6  ;;  %v123_v16 = vadd.f32 %v121_v8, %v117_v4  ;;  %v127_v17 = vmul.f32 %v125_v61, %v88_v6 }
  0x28   :  { %111 = vst.msk [vmem:[%s326_s2] ss:$4 sm:$0x3] %vm280_vm0, %v105_v10  ;;  %v130_v18 = vmax.f32 %v128_v11, 0.0  ;;  %v142_v19 = vmul.f32 %v141_v12, %v69_v42  ;;  %v148_v20 = vmul.f32 %v147_v13, %v87_v50  ;;  %v139_v21 = vmul.f32 %v137_v5, %v52_v54 }
  0x29   :  { %v104_v22 = vadd.f32 %v102_v15, %v98_v14  ;;  %v129_v23 = vadd.f32 %v127_v17, %v123_v16  ;;  %v143_v24 = vmul.f32 %v141_v12, %v70_v62  ;;  %v149_v25 = vmul.f32 %v147_v13, %v88_v6 }
  0x2a   :  { %183 = vst.msk [vmem:[%s326_s2 + $0x1] ss:$4 sm:$0x3] %vm280_vm0, %v130_v18  ;;  %v144_v26 = vadd.f32 %v142_v19, %v138_v9 }
  0x2b   :  { %v106_v27 = vmax.f32 %v104_v22, 0.0  ;;  %v131_v28 = vmax.f32 %v129_v23, 0.0  ;;  %v145_v29 = vadd.f32 %v143_v24, %v139_v21 }
  0x2c   :  { %v150_v30 = vadd.f32 %v148_v20, %v144_v26 }
  0x2d   :  { %179 = vst.msk [vmem:[%s326_s2 + $0x8] ss:$4 sm:$0x3] %vm280_vm0, %v106_v27  ;;  %184 = vst.msk [vmem:[%s326_s2 + $0x9] ss:$4 sm:$0x3] %vm280_vm0, %v131_v28  ;;  %v151_v31 = vadd.f32 %v149_v25, %v145_v29 }
  0x2e   :  { %v152_v32 = vmax.f32 %v150_v30, 0.0 }
  0x2f   :  { %v153_v33 = vmax.f32 %v151_v31, 0.0 }
  0x30   :  { %188 = vst.msk [vmem:[%s326_s2 + $0x2] ss:$4 sm:$0x3] %vm280_vm0, %v152_v32 }
  0x31   :  { %189 = vst.msk [vmem:[%s326_s2 + $0xa] ss:$4 sm:$0x3] %vm280_vm0, %v153_v33 }
  0x32   :  { %162 = vsyncpa [#allocation3], 1 }

</bundles_post_ra>
